<compile_context>
chip_gen: v7x
topology: tpu7x:2x2x1
jax: 0.10.0
libtpu: 0.0.40
codegen_flags: <defaults>
</compile_context>

<pallas_src>
import functools
import math

import jax
import jax.numpy as jnp
from jax.experimental import pallas as pl
from jax.experimental.pallas import tpu as pltpu


def _round_up(x: int, m: int) -> int:
    return ((x + m - 1) // m) * m


# ---------------------------------------------------------------------------
# Fused kernel: all layers chained, weights VMEM-resident, activations in
# bf16 between layers, intermediates never touch HBM.
# ---------------------------------------------------------------------------
def _mlp_fused_kernel(x_ref, w0_ref, ws_ref, b_ref, o_ref, *,
                      n_hidden: int, Hp: int, Np: int):
    act_dt = ws_ref.dtype
    bias = b_ref[...]                               # (n_layers, 1, Wp) f32, tiny

    # ---- layer 0: single lane-dense K=128 MXU pass (logsnr is column in_dim
    # of the packed x block, so no concat / rank-1 update is needed) ---------
    h = jnp.dot(x_ref[...], w0_ref[...], preferred_element_type=jnp.float32)
    h = h + bias[0, :, :Hp]
    h = jnp.maximum(h, 0.0).astype(act_dt)          # bf16 activation carry

    # ---- hidden layers: bf16 MXU matmuls, f32 accumulate + bias ------------
    for l in range(n_hidden):                        # static unroll
        w = ws_ref[l]                                # (Hp, Wp) bf16
        h = jnp.dot(h, w[:, :Hp], preferred_element_type=jnp.float32)
        h = h + bias[1 + l, :, :Hp]
        h = jnp.maximum(h, 0.0).astype(act_dt)

    # ---- last layer: no activation; lane-dense (tm, Np) store --------------
    wl = ws_ref[n_hidden]                            # (Hp, Wp) bf16
    y = jnp.dot(h, wl[:, :Np], preferred_element_type=jnp.float32)
    y = y + bias[n_hidden + 1, :, :Np]
    o_ref[...] = y.astype(o_ref.dtype)


# ---------------------------------------------------------------------------
# Parameter init (PyTorch nn.Linear style), packing, wrapper, reference
# ---------------------------------------------------------------------------
def init_mlp_params(key, in_dim, hidden_dim, n_layers, dtype=jnp.float32):
    """Uniform +/- 1/sqrt(fan_in) init; returns [(W_t, b)] with W_t=(in,out)."""
    dims = [(in_dim + 1, hidden_dim)]
    for _ in range(n_layers - 2):
        dims.append((hidden_dim, hidden_dim))
    dims.append((hidden_dim, in_dim))

    params = []
    for (fan_in, fan_out) in dims:
        key, kw, kb = jax.random.split(key, 3)
        bound = 1.0 / math.sqrt(fan_in)
        w_t = jax.random.uniform(kw, (fan_in, fan_out), dtype,
                                 minval=-bound, maxval=bound)
        b = jax.random.uniform(kb, (fan_out,), dtype,
                               minval=-bound, maxval=bound)
        params.append((w_t, b))
    return params


def pack_mlp_params(params, in_dim, hidden_dim, n_layers,
                    param_dtype=jnp.bfloat16):
    """Pad feature dims to 128 lanes, pack W0 (incl. logsnr row) as one block,
    stack hidden + last weights into a single slab, stack all biases."""
    K0 = _round_up(in_dim + 1, 128)
    Hp = _round_up(hidden_dim, 128)
    Np = _round_up(in_dim, 128)
    Wp = max(Hp, Np)
    n_hidden = n_layers - 2

    # Layer 0 weight: (in_dim+1, hidden) -> (K0, Hp) bf16 (logsnr row included).
    w0_t, _ = params[0]
    w0 = jnp.pad(w0_t.astype(param_dtype),
                 ((0, K0 - (in_dim + 1)), (0, Hp - hidden_dim)))

    # Hidden + last weights stacked: (n_layers-1, Hp, Wp) bf16.
    mats = []
    for l in range(n_hidden):
        w_t, _ = params[1 + l]                        # (hidden, hidden)
        mats.append(jnp.pad(w_t.astype(param_dtype),
                            ((0, Hp - hidden_dim), (0, Wp - hidden_dim))))
    wl_t, _ = params[-1]                              # (hidden, in_dim)
    mats.append(jnp.pad(wl_t.astype(param_dtype),
                        ((0, Hp - hidden_dim), (0, Wp - in_dim))))
    wstack = jnp.stack(mats, axis=0)

    # Biases stacked: (n_layers, 1, Wp) f32.
    bs = []
    for (_, b) in params:
        bs.append(jnp.pad(b.astype(jnp.float32), (0, Wp - b.shape[0]))[None, :])
    b_all = jnp.stack(bs, axis=0)

    return dict(w0=w0, wstack=wstack, b_all=b_all)


def mlp_forward_pallas(packed, x, logsnr, *, tm_max=256):
    """Full fused MLP forward.  x:(B,in_dim), logsnr:(B,) -> (B,in_dim)."""
    B, in_dim = x.shape
    w0 = packed["w0"]
    wstack = packed["wstack"]
    b_all = packed["b_all"]

    K0 = w0.shape[0]
    Hp = w0.shape[1]
    Wp = wstack.shape[2]
    n_layers = b_all.shape[0]
    n_hidden = n_layers - 2
    Np = _round_up(in_dim, 128)
    w_dt = w0.dtype

    # Batch tiling: multiples of 8 sublanes; force >=2 grid steps whenever
    # B > 8 so v7x's 2 TensorCores both get work (batch axis is "parallel").
    Bp = _round_up(B, 8)
    if B > 8:
        tm = min(tm_max, _round_up(pl.cdiv(Bp, 2), 8))
    else:
        tm = Bp
    Bp = _round_up(Bp, tm)
    grid = (Bp // tm,)

    # Pack [x | logsnr | 0-pad] into a lane-dense (Bp, K0) bf16 block.
    xin = jnp.concatenate([x.astype(jnp.float32),
                           logsnr.astype(jnp.float32)[:, None]], axis=1)
    xin = jnp.pad(xin, ((0, Bp - B), (0, K0 - (in_dim + 1))))
    xin = xin.astype(w_dt)

    # Explicit VMEM budget (double-buffered tiles + resident weights).
    wsz = jnp.dtype(w_dt).itemsize
    est = 2 * (tm * K0 * wsz            # x tile
               + tm * Np * 4            # out tile
               + K0 * Hp * wsz          # w0
               + (n_layers - 1) * Hp * Wp * wsz
               + n_layers * Wp * 4)
    vmem_limit = int(min(64 << 20, max(32 << 20, est + (2 << 20))))

    kernel = functools.partial(_mlp_fused_kernel,
                               n_hidden=n_hidden, Hp=Hp, Np=Np)

    out_p = pl.pallas_call(
        kernel,
        out_shape=jax.ShapeDtypeStruct((Bp, Np), jnp.float32),
        grid=grid,
        in_specs=[
            pl.BlockSpec((tm, K0), lambda i: (i, 0)),                    # x|logsnr
            pl.BlockSpec((K0, Hp), lambda i: (0, 0)),                    # W0
            pl.BlockSpec((n_layers - 1, Hp, Wp), lambda i: (0, 0, 0)),   # Ws
            pl.BlockSpec((n_layers, 1, Wp), lambda i: (0, 0, 0)),        # biases
        ],
        out_specs=pl.BlockSpec((tm, Np), lambda i: (i, 0)),              # lane-dense
        compiler_params=pltpu.CompilerParams(
            dimension_semantics=("parallel",),
            vmem_limit_bytes=vmem_limit,
        ),
    )(xin, w0, wstack, b_all)

    return out_p[:B, :in_dim]


def mlp_reference(params, x, logsnr, param_dtype=None):
    """Pure-JAX reference of the original (concat) semantics.

    If `param_dtype` is given, weights AND every layer's input activation
    (including layer 0, matching the kernel's bf16 input block) are quantized
    the same way the kernel does, so the comparison isolates implementation
    error from intended bf16 rounding."""
    def q(a):
        if param_dtype is None:
            return a
        return a.astype(param_dtype).astype(jnp.float32)

    h = jnp.concatenate([x, logsnr[:, None]], axis=1).astype(jnp.float32)
    n = len(params)
    for i, (w_t, b) in enumerate(params):
        h = jnp.dot(q(h), q(w_t), precision=jax.lax.Precision.HIGHEST) + b
        if i != n - 1:
            h = jnp.maximum(h, 0.0)
    return h


if __name__ == "__main__":
    in_dim, hidden_dim, n_layers = 4, 32, 3
    param_dtype = jnp.bfloat16   # bf16 weights/activations, f32 accumulate

    key = jax.random.PRNGKey(0)
    kp, kx, ks = jax.random.split(key, 3)

    params = init_mlp_params(kp, in_dim, hidden_dim, n_layers)   # f32 master
    packed = pack_mlp_params(params, in_dim, hidden_dim, n_layers,
                             param_dtype=param_dtype)

    fwd = jax.jit(mlp_forward_pallas, static_argnames=("tm_max",))

    # batch=8 -> single grid step; batch=13 -> padded remainder + 2-step grid.
    for batch in (8, 13):
        kx, kxb = jax.random.split(kx)
        ks, ksb = jax.random.split(ks)
        x = jax.random.normal(kxb, (batch, in_dim), jnp.float32)
        logsnr = jax.random.normal(ksb, (batch,), jnp.float32)

        out = fwd(packed, x, logsnr)
        jax.block_until_ready(out)
        assert out.shape == (batch, in_dim), out.shape

        ref = mlp_reference(params, x, logsnr, param_dtype=param_dtype)
        err = float(jnp.max(jnp.abs(out - ref)))
        assert jnp.allclose(out, ref, atol=2e-2, rtol=2e-2), err

    print("KERNEL_OK")
</pallas_src>

<mosaic_0001>
module attributes {stable_mosaic.version = 11 : i64} {
  func.func @_mlp_fused_kernel(%arg0: i32, %arg1: memref<8x128xbf16, #tpu.memory_space<vmem>>, %arg2: memref<128x128xbf16, #tpu.memory_space<vmem>>, %arg3: memref<2x128x128xbf16, #tpu.memory_space<vmem>>, %arg4: memref<3x1x128xf32, #tpu.memory_space<vmem>>, %arg5: memref<8x128xf32, #tpu.memory_space<vmem>>) attributes {dimension_semantics = [#tpu.dimension_semantics<parallel>], iteration_bounds = array<i64: 1>, scalar_prefetch = 0 : i64, scratch_operands = 0 : i64, tpu.core_type = #tpu.core_type<tc>, window_params = [{transform_indices = @transform_0, window_bounds = array<i64: 8, 128>}, {pipeline_mode = #tpu.pipeline_mode<synchronous>, transform_indices = @transform_1, window_bounds = array<i64: 128, 128>}, {pipeline_mode = #tpu.pipeline_mode<synchronous>, transform_indices = @transform_2, window_bounds = array<i64: 2, 128, 128>}, {pipeline_mode = #tpu.pipeline_mode<synchronous>, transform_indices = @transform_3, window_bounds = array<i64: 3, 1, 128>}, {transform_indices = @transform_4, window_bounds = array<i64: 8, 128>}]} {
    %c0 = arith.constant 0 : index
    %c0_0 = arith.constant 0 : index
    %c0_1 = arith.constant 0 : index
    %0 = vector.load %arg4[%c0, %c0_0, %c0_1] : memref<3x1x128xf32, #tpu.memory_space<vmem>>, vector<3x1x128xf32>
    %c0_2 = arith.constant 0 : index
    %c0_3 = arith.constant 0 : index
    %1 = vector.load %arg1[%c0_2, %c0_3] : memref<8x128xbf16, #tpu.memory_space<vmem>>, vector<8x128xbf16>
    %c0_4 = arith.constant 0 : index
    %c0_5 = arith.constant 0 : index
    %2 = vector.load %arg2[%c0_4, %c0_5] : memref<128x128xbf16, #tpu.memory_space<vmem>>, vector<128x128xbf16>
    %cst = arith.constant dense<0.000000e+00> : vector<8x128xf32>
    %3 = tpu.matmul %1, %2, %cst {dimension_numbers = #tpu.dot_dimension_numbers<[1], [0], [0], [1], [0, 0, 1, 1], [], []>} : vector<8x128xbf16>, vector<128x128xbf16>, vector<8x128xf32> -> vector<8x128xf32>
    %4 = vector.extract_strided_slice %0 {offsets = [0, 0, 0], sizes = [1, 1, 128], strides = [1, 1, 1]} : vector<3x1x128xf32> to vector<1x1x128xf32>
    %5 = vector.shape_cast %4 : vector<1x1x128xf32> to vector<1x128xf32>
    %6 = vector.broadcast %5 : vector<1x128xf32> to vector<8x128xf32>
    %7 = arith.addf %3, %6 : vector<8x128xf32>
    %cst_6 = arith.constant 0.000000e+00 : f32
    %8 = vector.broadcast %cst_6 : f32 to vector<8x128xf32>
    %9 = arith.maximumf %7, %8 : vector<8x128xf32>
    %10 = arith.truncf %9 : vector<8x128xf32> to vector<8x128xbf16>
    %c0_7 = arith.constant 0 : index
    %c0_8 = arith.constant 0 : index
    %c0_9 = arith.constant 0 : index
    %11 = vector.load %arg3[%c0_7, %c0_8, %c0_9] : memref<2x128x128xbf16, #tpu.memory_space<vmem>>, vector<1x128x128xbf16>
    %12 = vector.shape_cast %11 : vector<1x128x128xbf16> to vector<128x128xbf16>
    %cst_10 = arith.constant dense<0.000000e+00> : vector<8x128xf32>
    %13 = tpu.matmul %10, %12, %cst_10 {dimension_numbers = #tpu.dot_dimension_numbers<[1], [0], [0], [1], [0, 0, 1, 1], [], []>} : vector<8x128xbf16>, vector<128x128xbf16>, vector<8x128xf32> -> vector<8x128xf32>
    %14 = vector.extract_strided_slice %0 {offsets = [1, 0, 0], sizes = [1, 1, 128], strides = [1, 1, 1]} : vector<3x1x128xf32> to vector<1x1x128xf32>
    %15 = vector.shape_cast %14 : vector<1x1x128xf32> to vector<1x128xf32>
    %16 = vector.broadcast %15 : vector<1x128xf32> to vector<8x128xf32>
    %17 = arith.addf %13, %16 : vector<8x128xf32>
    %cst_11 = arith.constant 0.000000e+00 : f32
    %18 = vector.broadcast %cst_11 : f32 to vector<8x128xf32>
    %19 = arith.maximumf %17, %18 : vector<8x128xf32>
    %20 = arith.truncf %19 : vector<8x128xf32> to vector<8x128xbf16>
    %c1 = arith.constant 1 : index
    %c0_12 = arith.constant 0 : index
    %c0_13 = arith.constant 0 : index
    %21 = vector.load %arg3[%c1, %c0_12, %c0_13] : memref<2x128x128xbf16, #tpu.memory_space<vmem>>, vector<1x128x128xbf16>
    %22 = vector.shape_cast %21 : vector<1x128x128xbf16> to vector<128x128xbf16>
    %cst_14 = arith.constant dense<0.000000e+00> : vector<8x128xf32>
    %23 = tpu.matmul %20, %22, %cst_14 {dimension_numbers = #tpu.dot_dimension_numbers<[1], [0], [0], [1], [0, 0, 1, 1], [], []>} : vector<8x128xbf16>, vector<128x128xbf16>, vector<8x128xf32> -> vector<8x128xf32>
    %24 = vector.extract_strided_slice %0 {offsets = [2, 0, 0], sizes = [1, 1, 128], strides = [1, 1, 1]} : vector<3x1x128xf32> to vector<1x1x128xf32>
    %25 = vector.shape_cast %24 : vector<1x1x128xf32> to vector<1x128xf32>
    %26 = vector.broadcast %25 : vector<1x128xf32> to vector<8x128xf32>
    %27 = arith.addf %23, %26 : vector<8x128xf32>
    %c0_15 = arith.constant 0 : index
    %c0_16 = arith.constant 0 : index
    %28 = vector.load %arg5[%c0_15, %c0_16] : memref<8x128xf32, #tpu.memory_space<vmem>>, vector<8x128xf32>
    tpu.vector_store %arg5[%c0_15, %c0_16], %27 {strides = array<i32>} : memref<8x128xf32, #tpu.memory_space<vmem>>, vector<8x128xf32>,
    return
  }
  func.func @transform_0(%arg0: i32) -> (i32, i32) {
    %c0_i32 = arith.constant 0 : i32
    %c0_i32_0 = arith.constant 0 : i32
    return %arg0, %c0_i32 : i32, i32
  }
  func.func @transform_1(%arg0: i32) -> (i32, i32) {
    %c0_i32 = arith.constant 0 : i32
    %c0_i32_0 = arith.constant 0 : i32
    %c0_i32_1 = arith.constant 0 : i32
    return %c0_i32, %c0_i32_0 : i32, i32
  }
  func.func @transform_2(%arg0: i32) -> (i32, i32, i32) {
    %c0_i32 = arith.constant 0 : i32
    %c0_i32_0 = arith.constant 0 : i32
    %c0_i32_1 = arith.constant 0 : i32
    %c0_i32_2 = arith.constant 0 : i32
    return %c0_i32, %c0_i32_0, %c0_i32_1 : i32, i32, i32
  }
  func.func @transform_3(%arg0: i32) -> (i32, i32, i32) {
    %c0_i32 = arith.constant 0 : i32
    %c0_i32_0 = arith.constant 0 : i32
    %c0_i32_1 = arith.constant 0 : i32
    %c0_i32_2 = arith.constant 0 : i32
    return %c0_i32, %c0_i32_0, %c0_i32_1 : i32, i32, i32
  }
  func.func @transform_4(%arg0: i32) -> (i32, i32) {
    %c0_i32 = arith.constant 0 : i32
    %c0_i32_0 = arith.constant 0 : i32
    return %arg0, %c0_i32 : i32, i32
  }
}

</mosaic_0001>

<bundles_post_ra>
// kernel: mlp_forward_pallas.1
= control target key start
LH: loop header
LB: loop body
LE: loop exit
PB: predicated region body
PF: predicated region fallthrough
CT: control target
= control target key end

     0   :  { %9 = vsyncpa [#allocation3], 0  ;;  %s684_s0 = inlined_call_operand.vmem [shape: bf16[8,128], index: 0, kind: input, shape index: {}]   ;;  %s685_s1 = inlined_call_operand.hbm [shape: bf16[128,128], index: 1, kind: input, shape index: {}]   ;;  %s686_s2 = inlined_call_operand.hbm [shape: bf16[2,128,128], index: 2, kind: input, shape index: {}]   ;;  %s687_s3 = inlined_call_operand.vmem [shape: f32[3,1,128], index: 3, kind: input, shape index: {}]   ;;  %s688_s4 = inlined_call_operand.vmem [shape: f32[8,128], index: 4, kind: output, shape index: {}]  }
   0x1   :  { %10 = vsyncpa [#allocation5], 0  ;;  %s584_s15 = smov [#allocation2]   ;;  %s536_s19 = scalar_lea.hbm %s685_s1, 1024 }
   0x2   :  { %s18_s16 = sshll.u32 %s584_s15, 4  ;;  %p537_p0 = scmp.ne.s32.totalorder %s685_s1, %s536_s19  ;;  %s19_s16 = int_to_ptr.vmem [resolvable:$true] %s18_s16 }
   0x3   :  { %p540_p1 = scmp.lt.u32.totalorder %s536_s19, %s685_s1 }
   0x5   :  { %p542_p2 = pnand %p540_p1, %p537_p0 }
   0x7   :  { %545 = shalt.err (!%p542_p2)
}
   0x8   :  { %s546_s24 = scalar_lea.vmem %s19_s16, 1024  ;;  %p551_p4 = scmp.lt.s32.totalorder %s19_s16, %s19_s16 }
   0x9   :  { %p547_p3 = scmp.ne.s32.totalorder %s19_s16, %s546_s24  ;;  %p552_p5 = scmp.lt.s32.totalorder %s546_s24, %s546_s24 }
   0xb   :  { %p553_p6 = por %p552_p5, %p551_p4 }
   0xd   :  { %p554_p7 = pnand %p553_p6, %p547_p3 }
   0xf   :  { %557 = shalt.err (!%p554_p7)
}
  0x10   :  { %s585_s25 = smov 64   ;;  %s586_s26 = smov 4  }
  0x11   :  { %24 = dma.hbm_to_vmem [thread:$0]  %s685_s1, 1024, %s19_s16, [#allocation3], %s585_s25, %s585_s25, %s586_s26  }
  0x12   :  { %s587_s29 = smov [#allocation4]   ;;  %s558_s7 = scalar_lea.hbm %s686_s2, 2048 }
  0x13   :  { %s30_s30 = sshll.u32 %s587_s29, 4  ;;  %p559_p8 = scmp.ne.s32.totalorder %s686_s2, %s558_s7  ;;  %s31_s30 = int_to_ptr.vmem [resolvable:$true] %s30_s30 }
  0x14   :  { %p562_p9 = scmp.lt.u32.totalorder %s558_s7, %s686_s2 }
  0x16   :  { %p564_p10 = pnand %p562_p9, %p559_p8 }
  0x18   :  { %567 = shalt.err (!%p564_p10)
}
  0x19   :  { %s568_s12 = scalar_lea.vmem %s31_s30, 2048  ;;  %p573_p12 = scmp.lt.s32.totalorder %s31_s30, %s31_s30 }
  0x1a   :  { %p569_p11 = scmp.ne.s32.totalorder %s31_s30, %s568_s12  ;;  %p574_p13 = scmp.lt.s32.totalorder %s568_s12, %s568_s12 }
  0x1c   :  { %p575_p0 = por %p574_p13, %p573_p12 }
  0x1e   :  { %p576_p1 = pnand %p575_p0, %p569_p11 }
  0x20   :  { %579 = shalt.err (!%p576_p1)
}
  0x21   :  { %36 = dma.hbm_to_vmem [thread:$0]  %s686_s2, 2048, %s31_s30, [#allocation5], %s585_s25, %s585_s25, %s586_s26  }
  0x22   :  { %580 = dma.done.wait [#allocation3], 1024  }
  0x23   :  { %581 = vsyncadd [#allocation3], 4294966272 }
  0x24   :  { %582 = dma.done.wait [#allocation5], 2048  }
  0x25   :  { %583 = vsyncadd [#allocation5], 4294965248  ;;  %v588_v0 = vmov 0.0   ;;  %vm589_vm0 = vmmov 0   ;;  %v512_v1 = vld [vmem:[#allocation2] sm:$0xff]   ;;  %v513_v2 = vld [vmem:[#allocation2 + $0x8] sm:$0xff]  }
  0x26   :  { %446 = vmatprep.subr.bf16.mxu0 %v588_v0  ;;  %462 = vmatprep.mubr.msk.bf16.mxu0 %vm589_vm0, %v588_v0  ;;  %v514_v3 = vld [vmem:[#allocation2 + $0x10] sm:$0xff]   ;;  %v520_v4 = vld [vmem:[#allocation4] sm:$0xff]   ;;  %v515_v5 = vld [vmem:[#allocation2 + $0x18] sm:$0xff]  }
  0x27   :  { %466 = vmatprep.subr.bf16.mxu1 %v588_v0  ;;  %482 = vmatprep.mubr.msk.bf16.mxu1 %vm589_vm0, %v588_v0  ;;  %v521_v6 = vld [vmem:[#allocation4 + $0x8] sm:$0xff]   ;;  %v516_v7 = vld [vmem:[#allocation2 + $0x20] sm:$0xff]   ;;  %v522_v8 = vld [vmem:[#allocation4 + $0x10] sm:$0xff]  }
  0x28   :  { %447 = vmatpush3.bf16.msra.mxu0 %v512_v1  ;;  %467 = vmatpush3.bf16.msra.mxu1 %v520_v4  ;;  %v517_v9 = vld [vmem:[#allocation2 + $0x28] sm:$0xff]   ;;  %v523_v10 = vld [vmem:[#allocation4 + $0x18] sm:$0xff]   ;;  %v518_v11 = vld [vmem:[#allocation2 + $0x30] sm:$0xff]  }
  0x29   :  { %448 = vmatprep.subr.bf16.mxu0 %v588_v0  ;;  %468 = vmatprep.subr.bf16.mxu1 %v588_v0  ;;  %v524_v12 = vld [vmem:[#allocation4 + $0x20] sm:$0xff]   ;;  %v519_v13 = vld [vmem:[#allocation2 + $0x38] sm:$0xff]   ;;  %v525_v14 = vld [vmem:[#allocation4 + $0x28] sm:$0xff]  }
  0x2a   :  { %v49_v15 = vld [vmem:[%s684_s0] sm:$0xf]  ;;  %v526_v16 = vld [vmem:[#allocation4 + $0x30] sm:$0xff]   ;;  %v527_v17 = vld [vmem:[#allocation4 + $0x38] sm:$0xff]  }
  0x2b   :  { %v528_v18 = vld [vmem:[#allocation4 + $0x40] sm:$0xff]   ;;  %v529_v19 = vld [vmem:[#allocation4 + $0x48] sm:$0xff]   ;;  %v530_v20 = vld [vmem:[#allocation4 + $0x50] sm:$0xff]  }
  0x2c   :  { %449 = vmatpush3.bf16.msra.mxu0 %v513_v2  ;;  %469 = vmatpush3.bf16.msra.mxu1 %v521_v6  ;;  %v531_v21 = vld [vmem:[#allocation4 + $0x58] sm:$0xff]   ;;  %v532_v22 = vld [vmem:[#allocation4 + $0x60] sm:$0xff]   ;;  %v533_v23 = vld [vmem:[#allocation4 + $0x68] sm:$0xff]  }
  0x2d   :  { %450 = vmatprep.subr.bf16.mxu0 %v588_v0  ;;  %470 = vmatprep.subr.bf16.mxu1 %v588_v0  ;;  %v392_v24 = vld [vmem:[%s687_s3] ss:$0 sm:$0xff]  ;;  %v534_v32 = vld [vmem:[#allocation4 + $0x70] sm:$0xff]   ;;  %v535_v33 = vld [vmem:[#allocation4 + $0x78] sm:$0xff]  }
  0x2e   :  { %v401_v34 = vld [vmem:[%s687_s3 + $0x1] ss:$0 sm:$0xff]  ;;  %v410_v42 = vld [vmem:[%s687_s3 + $0x2] ss:$0 sm:$0xff] }
  0x30   :  { %451 = vmatpush3.bf16.msra.mxu0 %v514_v3  ;;  %471 = vmatpush3.bf16.msra.mxu1 %v522_v8 }
  0x31   :  { %452 = vmatprep.subr.bf16.mxu0 %v588_v0  ;;  %472 = vmatprep.subr.bf16.mxu1 %v588_v0 }
  0x34   :  { %453 = vmatpush3.bf16.msra.mxu0 %v515_v5  ;;  %473 = vmatpush3.bf16.msra.mxu1 %v523_v10 }
  0x35   :  { %454 = vmatprep.subr.bf16.mxu0 %v588_v0  ;;  %474 = vmatprep.subr.bf16.mxu1 %v588_v0 }
  0x38   :  { %455 = vmatpush3.bf16.msra.mxu0 %v516_v7  ;;  %475 = vmatpush3.bf16.msra.mxu1 %v524_v12 }
  0x39   :  { %456 = vmatprep.subr.bf16.mxu0 %v588_v0  ;;  %476 = vmatprep.subr.bf16.mxu1 %v588_v0 }
  0x3c   :  { %457 = vmatpush3.bf16.msra.mxu0 %v517_v9  ;;  %477 = vmatpush3.bf16.msra.mxu1 %v525_v14 }
  0x3d   :  { %458 = vmatprep.subr.bf16.mxu0 %v588_v0  ;;  %478 = vmatprep.subr.bf16.mxu1 %v588_v0 }
  0x40   :  { %459 = vmatpush3.bf16.msra.mxu0 %v518_v11  ;;  %479 = vmatpush3.bf16.msra.mxu1 %v526_v16 }
  0x41   :  { %460 = vmatprep.subr.bf16.mxu0 %v588_v0  ;;  %480 = vmatprep.subr.bf16.mxu1 %v588_v0 }
  0x44   :  { %461 = vmatpush3.bf16.msra.mxu0 %v519_v13  ;;  %481 = vmatpush3.bf16.msra.mxu1 %v527_v17 }
  0x45   :  { %486 = vmatprep.subr.bf16.mxu0 %v588_v0 }
  0x47   :  { %463 = vmatmul.mubr.bf16.vlgmr.msra.gmra.mrb[0].mxu0 %v49_v15 }
  0x48   :  { %502 = vmatprep.mubr.msk.bf16.mxu0 %vm589_vm0, %v588_v0  ;;  %487 = vmatpush3.bf16.msra.mxu0 %v528_v18 }
  0x49   :  { %488 = vmatprep.subr.bf16.mxu0 %v588_v0 }
  0x4c   :  { %489 = vmatpush3.bf16.msra.mxu0 %v529_v19 }
  0x4d   :  { %490 = vmatprep.subr.bf16.mxu0 %v588_v0 }
  0x50   :  { %491 = vmatpush3.bf16.msra.mxu0 %v530_v20 }
  0x51   :  { %492 = vmatprep.subr.bf16.mxu0 %v588_v0 }
  0x54   :  { %493 = vmatpush3.bf16.msra.mxu0 %v531_v21 }
  0x55   :  { %494 = vmatprep.subr.bf16.mxu0 %v588_v0 }
  0x58   :  { %495 = vmatpush3.bf16.msra.mxu0 %v532_v22 }
  0x59   :  { %496 = vmatprep.subr.bf16.mxu0 %v588_v0 }
  0x5c   :  { %497 = vmatpush3.bf16.msra.mxu0 %v533_v23 }
  0x5d   :  { %498 = vmatprep.subr.bf16.mxu0 %v588_v0 }
  0x60   :  { %499 = vmatpush3.bf16.msra.mxu0 %v534_v32 }
  0x61   :  { %500 = vmatprep.subr.bf16.mxu0 %v588_v0 }
  0x64   :  { %501 = vmatpush3.bf16.msra.mxu0 %v535_v33 }
 0x11a   :  { %v154_v25 = vpop.f32.mrb[0].mxu0 }
 0x11b   :  { %v155_v26 = vadd.f32 %v392_v24, %v154_v25  ;;  %v464_v27 = vpop.f32.mrb[1].mxu0 }
 0x11c   :  { %v157_v28 = vpop.f32.mrb[2].mxu0 }
 0x11d   :  { %v160_v29 = vmax.f32 %v155_v26, 0.0  ;;  %v465_v30 = vpop.f32.mrb[3].mxu0 }
 0x11f   :  { %v161_v31 = vpack.c.bf16 %v160_v29, %v160_v29 }
 0x121   :  { %483 = vmatmul.mubr.bf16.vlgmr.msra.gmra.mrb[0].mxu1 %v161_v31 }
 0x1f4   :  { %v266_v35 = vpop.f32.mrb[0].mxu1 }
 0x1f5   :  { %v267_v36 = vadd.f32 %v401_v34, %v266_v35  ;;  %v484_v37 = vpop.f32.mrb[1].mxu1 }
 0x1f6   :  { %v269_v38 = vpop.f32.mrb[2].mxu1 }
 0x1f7   :  { %v272_v39 = vmax.f32 %v267_v36, 0.0  ;;  %v485_v40 = vpop.f32.mrb[3].mxu1 }
 0x1f9   :  { %v273_v41 = vpack.c.bf16 %v272_v39, %v272_v39 }
 0x1fb   :  { %503 = vmatmul.mubr.bf16.vlgmr.msra.gmra.mrb[4].mxu0 %v273_v41 }
 0x2ce   :  { %v379_v43 = vpop.f32.mrb[4].mxu0 }
 0x2cf   :  { %v380_v44 = vadd.f32 %v410_v42, %v379_v43  ;;  %v504_v45 = vpop.f32.mrb[5].mxu0 }
 0x2d0   :  { %v382_v46 = vpop.f32.mrb[6].mxu0 }
 0x2d1   :  { %385 = vst [vmem:[%s688_s4] sm:$0xff] %v380_v44  ;;  %v505_v47 = vpop.f32.mrb[7].mxu0 }
 0x2d2   :  { %390 = vsyncpa [#allocation3], 1 }
 0x2d3   :  { %391 = vsyncpa [#allocation5], 1 }

</bundles_post_ra>
